<compile_context>
chip_gen: v7x
topology: tpu7x:2x2x1
jax: 0.10.0
libtpu: 0.0.40
codegen_flags: <defaults>
</compile_context>

<pallas_src>
import functools

import jax
import jax.numpy as jnp
import numpy as np
from jax.experimental import pallas as pl
from jax.experimental.pallas import tpu as pltpu


# ---------------------------------------------------------------------------
# Pass 1: tiled spatial reduction  x[B, C, HW] -> pooled mean [B, C, 1] (f32)
# ---------------------------------------------------------------------------
def _pool_sum_kernel(x_ref, o_ref, *, inv_hw):
    # x_ref: (1, C, THW) tile, HW on the lane axis.
    # o_ref: (1, C, 1) f32 accumulator, resident across the reduction axis.
    t = pl.program_id(1)

    @pl.when(t == 0)
    def _init():
        o_ref[...] = jnp.zeros_like(o_ref)

    # Lane-axis reduce; accumulate in f32 without materializing an f32 copy.
    o_ref[...] += jnp.sum(x_ref[...], axis=-1, keepdims=True, dtype=jnp.float32)

    @pl.when(t == pl.num_programs(1) - 1)
    def _finalize():
        # Precomputed 1/HW constant (no division in the epilogue).
        o_ref[...] = o_ref[...] * inv_hw


# ---------------------------------------------------------------------------
# Pass 2: channelwise scale  out[b, c, hw] = x[b, c, hw] * gate[b, c]
# ---------------------------------------------------------------------------
def _scale_kernel(x_ref, g_ref, o_ref):
    # x_ref/o_ref: (1, C, THW) lane-dense tiles; g_ref: (1, C, 1) f32 gate.
    # Cast only the gate (bf16-friendly on v6e/v7x); exact for f32 inputs.
    g = g_ref[...].astype(x_ref.dtype)
    o_ref[...] = (x_ref[...] * g).astype(o_ref.dtype)


def _pick_hw_tile(hw, c, itemsize, budget_bytes=4 << 20):
    """Largest lane-dense (multiple-of-128) HW tile fitting a per-block budget.

    Small maps coarsen to the full HW extent (one big step); maps whose HW is
    not a multiple of 128 fall back to the full extent (block == array dim is
    always legal).
    """
    if hw % 128 != 0:
        return hw
    max_lanes = max(budget_bytes // (c * itemsize), 128)
    if hw <= max_lanes:
        return hw
    start = max_lanes - (max_lanes % 128)
    for cand in range(start, 127, -128):
        if hw % cand == 0:
            return cand
    return 128


def se_layer(x_nchw, w1, w2, *, hw_tile=None, vmem_budget_bytes=4 << 20):
    """x_nchw: [B, C, H, W]; w1: [Ch, C]; w2: [C, Ch] (PyTorch Linear weights)."""
    B, C, H, W = x_nchw.shape
    HW = H * W
    itemsize = jnp.dtype(x_nchw.dtype).itemsize

    if hw_tile is None:
        hw_tile = _pick_hw_tile(HW, C, itemsize, vmem_budget_bytes)
    assert HW % hw_tile == 0, (HW, hw_tile)
    n_tiles = HW // hw_tile

    # Free view of the NCHW storage: C on sublanes, HW on lanes. No HBM traffic.
    x = x_nchw.reshape(B, C, HW)

    # ---- pass 1: pooled channel means (tiled reduction, f32 accumulator) ----
    pooled = pl.pallas_call(
        functools.partial(_pool_sum_kernel, inv_hw=1.0 / float(HW)),
        out_shape=jax.ShapeDtypeStruct((B, C, 1), jnp.float32),
        grid=(B, n_tiles),
        in_specs=[pl.BlockSpec((1, C, hw_tile), lambda b, t: (b, 0, t))],
        out_specs=pl.BlockSpec((1, C, 1), lambda b, t: (b, 0, 0)),
        compiler_params=pltpu.CompilerParams(
            dimension_semantics=("parallel", "arbitrary")),
        cost_estimate=pl.CostEstimate(
            flops=B * C * HW,
            transcendentals=0,
            bytes_accessed=B * C * HW * itemsize + B * C * 4),
    )(x)

    # ---- excitation MLP hoisted out of the kernel (tiny; ~0 MXU utilization) ----
    y = pooled[:, :, 0]                                            # (B, C) f32
    h = jnp.maximum(y @ w1.T.astype(jnp.float32), 0.0)             # (B, Ch)
    gate = jax.nn.sigmoid(h @ w2.T.astype(jnp.float32))            # (B, C)
    gate = gate[:, :, None]                                        # (B, C, 1)

    # ---- pass 2: lane-dense channelwise scale, embarrassingly parallel ----
    out = pl.pallas_call(
        _scale_kernel,
        out_shape=jax.ShapeDtypeStruct((B, C, HW), x_nchw.dtype),
        grid=(B, n_tiles),
        in_specs=[
            pl.BlockSpec((1, C, hw_tile), lambda b, t: (b, 0, t)),
            pl.BlockSpec((1, C, 1), lambda b, t: (b, 0, 0)),
        ],
        out_specs=pl.BlockSpec((1, C, hw_tile), lambda b, t: (b, 0, t)),
        compiler_params=pltpu.CompilerParams(
            dimension_semantics=("parallel", "parallel")),
        cost_estimate=pl.CostEstimate(
            flops=B * C * HW,
            transcendentals=0,
            bytes_accessed=2 * B * C * HW * itemsize + B * C * 4),
    )(x, gate)

    # Free view back to NCHW.
    return out.reshape(B, C, H, W)


def se_layer_ref(x_nchw, w1, w2):
    y = jnp.mean(x_nchw.astype(jnp.float32), axis=(2, 3))          # (B, C)
    h = jnp.maximum(y @ w1.T.astype(jnp.float32), 0.0)
    s = jax.nn.sigmoid(h @ w2.T.astype(jnp.float32))
    return (x_nchw.astype(jnp.float32) * s[:, :, None, None]).astype(x_nchw.dtype)


if __name__ == "__main__":
    # Small feature-map sized like an intermediate ResUNet activation.
    # channel=32, reduction=16 -> hidden=2.
    B, C, H, W = 2, 32, 64, 64
    reduction = 16
    Ch = C // reduction

    key = jax.random.PRNGKey(0)
    kx, k1, k2 = jax.random.split(key, 3)
    x = jax.random.normal(kx, (B, C, H, W), dtype=jnp.float32)
    # Deterministic "Linear" weights (no bias), PyTorch shapes: (out, in).
    w1 = jax.random.normal(k1, (Ch, C), dtype=jnp.float32) * 0.1
    w2 = jax.random.normal(k2, (C, Ch), dtype=jnp.float32) * 0.1

    # hw_tile=1024 forces the multi-tile reduction / multi-tile parallel-scale
    # paths even at this toy size; production sizes use the VMEM-budgeted
    # default (largest lane-dense tile, >= 512 KiB moved per grid step).
    out = se_layer(x, w1, w2, hw_tile=1024)
    jax.block_until_ready(out)

    ref = se_layer_ref(x, w1, w2)
    np.testing.assert_allclose(np.asarray(out), np.asarray(ref),
                               rtol=1e-5, atol=1e-5)
    print("KERNEL_OK")
</pallas_src>

<mosaic_0001>
module attributes {stable_mosaic.version = 11 : i64} {
  func.func @_pool_sum_kernel(%arg0: i32, %arg1: i32, %arg2: memref<1x32x1024xf32, #tpu.memory_space<vmem>>, %arg3: memref<1x32x1xf32, #tpu.memory_space<vmem>>) attributes {dimension_semantics = [#tpu.dimension_semantics<parallel>, #tpu.dimension_semantics<arbitrary>], iteration_bounds = array<i64: 2, 4>, scalar_prefetch = 0 : i64, scratch_operands = 0 : i64, tpu.core_type = #tpu.core_type<tc>, window_params = [{transform_indices = @transform_0, window_bounds = array<i64: 1, 32, 1024>}, {transform_indices = @transform_1, window_bounds = array<i64: 1, 32, 1>}]} {
    %c0_i32 = arith.constant 0 : i32
    %0 = arith.cmpi eq, %arg1, %c0_i32 : i32
    %1 = arith.extui %0 : i1 to i32
    %c0_i32_0 = arith.constant 0 : i32
    %2 = arith.cmpi ne, %1, %c0_i32_0 : i32
    scf.if %2 {
      %cst_10 = arith.constant 0.000000e+00 : f32
      %12 = vector.broadcast %cst_10 : f32 to vector<1x32x1xf32>
      %c0_11 = arith.constant 0 : index
      %c0_12 = arith.constant 0 : index
      %c0_13 = arith.constant 0 : index
      %13 = vector.load %arg3[%c0_11, %c0_12, %c0_13] : memref<1x32x1xf32, #tpu.memory_space<vmem>>, vector<1x32x1xf32>
      tpu.vector_store %arg3[%c0_11, %c0_12, %c0_13], %12 {strides = array<i32>} : memref<1x32x1xf32, #tpu.memory_space<vmem>>, vector<1x32x1xf32>,
    } else {
    }
    %c0 = arith.constant 0 : index
    %c0_1 = arith.constant 0 : index
    %c0_2 = arith.constant 0 : index
    %3 = vector.load %arg3[%c0, %c0_1, %c0_2] : memref<1x32x1xf32, #tpu.memory_space<vmem>>, vector<1x32x1xf32>
    %c0_3 = arith.constant 0 : index
    %c0_4 = arith.constant 0 : index
    %c0_5 = arith.constant 0 : index
    %4 = vector.load %arg2[%c0_3, %c0_4, %c0_5] : memref<1x32x1024xf32, #tpu.memory_space<vmem>>, vector<1x32x1024xf32>
    %cst = arith.constant dense<0.000000e+00> : vector<1x32xf32>
    %5 = vector.multi_reduction <add>, %4, %cst [2] : vector<1x32x1024xf32> to vector<1x32xf32>
    %6 = vector.shape_cast %5 : vector<1x32xf32> to vector<1x32x1xf32>
    %7 = arith.addf %3, %6 : vector<1x32x1xf32>
    %c0_6 = arith.constant 0 : index
    %c0_7 = arith.constant 0 : index
    %c0_8 = arith.constant 0 : index
    %8 = vector.load %arg3[%c0_6, %c0_7, %c0_8] : memref<1x32x1xf32, #tpu.memory_space<vmem>>, vector<1x32x1xf32>
    tpu.vector_store %arg3[%c0_6, %c0_7, %c0_8], %7 {strides = array<i32>} : memref<1x32x1xf32, #tpu.memory_space<vmem>>, vector<1x32x1xf32>,
    %c3_i32 = arith.constant 3 : i32
    %9 = arith.cmpi eq, %arg1, %c3_i32 : i32
    %10 = arith.extui %9 : i1 to i32
    %c0_i32_9 = arith.constant 0 : i32
    %11 = arith.cmpi ne, %10, %c0_i32_9 : i32
    scf.if %11 {
      %c0_10 = arith.constant 0 : index
      %c0_11 = arith.constant 0 : index
      %c0_12 = arith.constant 0 : index
      %12 = vector.load %arg3[%c0_10, %c0_11, %c0_12] : memref<1x32x1xf32, #tpu.memory_space<vmem>>, vector<1x32x1xf32>
      %cst_13 = arith.constant 2.44140625E-4 : f32
      %13 = vector.broadcast %cst_13 : f32 to vector<1x32x1xf32>
      %14 = arith.mulf %12, %13 : vector<1x32x1xf32>
      %c0_14 = arith.constant 0 : index
      %c0_15 = arith.constant 0 : index
      %c0_16 = arith.constant 0 : index
      %15 = vector.load %arg3[%c0_14, %c0_15, %c0_16] : memref<1x32x1xf32, #tpu.memory_space<vmem>>, vector<1x32x1xf32>
      tpu.vector_store %arg3[%c0_14, %c0_15, %c0_16], %14 {strides = array<i32>} : memref<1x32x1xf32, #tpu.memory_space<vmem>>, vector<1x32x1xf32>,
    } else {
    }
    return
  }
  func.func @transform_0(%arg0: i32, %arg1: i32) -> (i32, i32, i32) {
    %c0_i32 = arith.constant 0 : i32
    %c0_i32_0 = arith.constant 0 : i32
    return %arg0, %c0_i32, %arg1 : i32, i32, i32
  }
  func.func @transform_1(%arg0: i32, %arg1: i32) -> (i32, i32, i32) {
    %c0_i32 = arith.constant 0 : i32
    %c0_i32_0 = arith.constant 0 : i32
    %c0_i32_1 = arith.constant 0 : i32
    return %arg0, %c0_i32, %c0_i32_0 : i32, i32, i32
  }
}

</mosaic_0001>

<bundles_post_ra>
// kernel: tpu_custom_call.1
= control target key start
LH: loop header
LB: loop body
LE: loop exit
PB: predicated region body
PF: predicated region fallthrough
CT: control target
= control target key end

     0   :  { %6 = vsyncpa [#allocation3], 0  ;;  %s761_s0 = inlined_call_operand.hbm [shape: f32[2,32,4096], index: 0, kind: input, shape index: {}]   ;;  %s762_s1 = inlined_call_operand.vmem [shape: f32[2,32,1], index: 1, kind: output, shape index: {}]  }
   0x1   :  { %8 = vsyncpa [#allocation3 + $0x1], 0  ;;  %s546_s6 = smov 0   ;;  %s548_s7 = smov 0  }
   0x2   :  { %s550_s8 = smov 0   ;;  %s552_s9 = smov 0  }
   0x3   :  { %s554_s10 = smov 0   ;;  %s556_s11 = smov 0  }
   0x4   :  { %s558_s12 = smov 0   ;;  %s560_s13 = smov 0  }
   0x5 LB: > { %s341_s14 = sadd.s32 4294967295, %s529_s13   ;;  %s23_s15 = sadd.s32 1, %s521_s11  ;;  %s529_s13 = sphi %s560_s13, %s14_s13   ;;  %s525_s12 = sphi %s558_s12, %s772_s12   ;;  %s521_s11 = sphi %s556_s11, %s771_s11   ;;  %s517_s10 = sphi %s554_s10, %s770_s10   ;;  %s513_s9 = sphi %s552_s9, %s769_s9   ;;  %s509_s8 = sphi %s550_s8, %s768_s8   ;;  %s505_s7 = sphi %s548_s7, %s767_s7   ;;  %s501_s6 = sphi %s546_s6, %s766_s6  }
   0x6   : > { %p24_p0 = scmp.ge.s32.totalorder %s23_s15, 4  ;;  %s26_s16 = sadd.s32 1, %s525_s12 }
   0x7   : > { %s35_s17 = sadd.s32 1, %s509_s8  ;;  %p42_p1 = scmp.ne.s32.totalorder %s509_s8, %s505_s7 }
   0x8   : > { %s774_s15 = smov (%p24_p0, %s23_s15), 0  ;;  %s776_s16 = smov (!%p24_p0, %s26_s16), %s525_s12 }
   0x9   : > { %s31_s18 = ssub.s32 %s521_s11, %s774_s15  ;;  %p43_p2 = scmp.eq.s32.totalorder %s529_s13, 0 }
   0xa   : > { %p28_p3 = scmp.ge.s32.totalorder %s776_s16, 2  ;;  %p48_p4 = scmp.ne.s32.totalorder %s505_s7, %s501_s6 }
   0xb   : > { %p597_p5 = por %p43_p2, %p42_p1  ;;  %p49_p6 = scmp.eq.s32.totalorder %s341_s14, 0 }
   0xc   : > { %s778_s16 = smov (%p28_p3, %s776_s16), 0  ;;  %p364_p8 = scmp.lt.s32.totalorder %s529_s13, 8 }
   0xd   : > { %p603_p7 = por %p49_p6, %p48_p4  ;;  %s30_s21 = ssub.s32 %s525_s12, %s778_s16 }
   0xe   : > { %s32_s22 = sor.u32 %s31_s18, %s30_s21  ;;  %s98_s23 = sand.u32 1, %s509_s8  }
   0xf   : > { %p33_p9 = scmp.eq.s32.totalorder %s32_s22, 0  ;;  %s345_s24 = sshll.u32 %s98_s23, 8 }
  0x10   : > { %s346_s25 = sshll.u32 %s521_s11, 3  ;;  %s347_s27 = sshll.u32 %s525_s12, 7 }
  0x11   : > { %s613_s26 = scalar_select %p33_p9, %s509_s8, %s35_s17  }
  0x12   : > { %s108_s28 = sadd.s32 %s347_s27, %s346_s25  ;;  %s102_s29 = scalar_lea.vmem [#allocation2], %s345_s24 }
  0x13   : > { %s111_s30 = sshll.u32 %s102_s29, 4  ;;  %s348_s2 = sshll.u32 %s108_s28, 7  ;;  %s616_s30 = int_to_ptr.vmem [resolvable:$true] %s111_s30 }
  0x14   : > { %s621_s5 = scalar_lea.hbm %s761_s0, %s348_s2  ;;  %p627_p10 = pnand %p364_p8, %p597_p5 }
  0x15   : > { %s631_s14 = scalar_lea.sflag [#allocation3], %s98_s23  ;;  %s433_s17 = scalar_lea.hbm %s621_s5, 4096 }
  0x16   : > { %p434_p11 = scmp.ne.s32.totalorder %s621_s5, %s433_s17  ;;  %p435_p12 = pneg %p627_p10 }
  0x17   : > { %s438_s21 = scalar_lea.hbm %s761_s0, 32768  ;;  %p439_p1 = scmp.lt.u32.totalorder %s621_s5, %s761_s0 }
  0x18   : > { %p436_p13 = pnand %p435_p12, %p434_p11  ;;  %p440_p2 = scmp.lt.u32.totalorder %s438_s21, %s433_s17 }
  0x19   : > { %p442_p4 = scmp.lt.u32.totalorder %s433_s17, %s621_s5 }
  0x1a   : > { %p437_p0 = pneg %p436_p13  ;;  %p441_p3 = por %p440_p2, %p439_p1 }
  0x1c   : > { %p443_p5 = por %p442_p4, %p441_p3 }
  0x1e   : > { %p444_p6 = pnand %p443_p5, %p437_p0 }
  0x20   : > { %447 = shalt.err (!%p444_p6)
}
  0x21   : > { %s448_s23 = scalar_lea.vmem %s616_s30, 4096  ;;  %s531_s25 = smov [#allocation2]  }
  0x22   : > { %p449_p8 = scmp.ne.s32.totalorder %s616_s30, %s448_s23  ;;  %s453_s27 = sshll.u32 %s531_s25, 4  ;;  %s454_s27 = int_to_ptr.vmem [resolvable:$false] %s453_s27 }
  0x23   : > { %s455_s28 = scalar_lea.vmem %s454_s27, 8192  ;;  %p456_p13 = scmp.lt.s32.totalorder %s616_s30, %s454_s27 }
  0x24   : > { %p451_p9 = pnand %p449_p8, %p435_p12  ;;  %p457_p1 = scmp.lt.s32.totalorder %s455_s28, %s448_s23 }
  0x26   : > { %p452_p11 = pneg %p451_p9  ;;  %p458_p2 = por %p457_p1, %p456_p13 }
  0x28   : > { %p459_p3 = pnand %p458_p2, %p452_p11 }
  0x2a   : > { %462 = shalt.err (!%p459_p3)
}
  0x2b   : > { %s532_s29 = smov 4096   ;;  %s533_s2 = smov 1024  }
  0x2c   : > { %s534_s3 = smov 64   ;;  %p349_p12 = scmp.ge.s32.totalorder %s529_s13, 1 }
  0x2d   : > { %363 = dma.hbm_to_vmem [thread:$0]  (!%p627_p10), %s621_s5, 4096, %s616_s30, %s631_s14, %s532_s29, %s533_s2, %s534_s3  }
  0x2e   : > { %p119_p0 = scmp.lt.s32.totalorder %s529_s13, 9 }
  0x30   : > { %p120_p4 = pnand %p349_p12, %p119_p0 }
  0x31   : > { %s125_s4 = sand.u32 (!%p120_p4), 1, %s505_s7  }
  0x32   : > { %123 = sbr.rel (%p120_p4) target bundleno = 242 (0xf2), region = 24  ;;  %s350_s17 = sshll.u32 (!%p120_p4), %s125_s4, 8 }
  0x33   : > { %s126_s18 = scalar_lea.sflag (!%p120_p4), [#allocation3], %s125_s4  ;;  %s662_s19 = scalar_lea.vmem (!%p120_p4), [#allocation2], %s350_s17 }
  0x39   : > { %496 = dma.done.wait (%p603_p7), %s126_s18, 4096  }
  0x3a   : > { %498 = vsyncadd (%p603_p7), %s126_s18, 4294963200  ;;  %p149_p5 = scmp.lt.s32.totalorder %s517_s10, 1  ;;  %p353_p10 = scmp.ne.s32.totalorder %s513_s9, 0 }
  0x3b   : > { %vm158_vm0 = vcmask (!%p353_p10), 7168   ;;  %v535_v0 = vmov (!%p353_p10), 0.0  }
  0x3c   : > { %s780_s10 = smov (!%p149_p5, %s517_s10), 1  ;;  %157 = sbr.rel (%p353_p10) target bundleno = 67 (0x43), region = 32 }
  0x3d   : > { %s357_s30 = sshll.u32 %s780_s10, 5 }
  0x3e   : > { %s673_s14 = scalar_lea.vmem %s762_s1, %s357_s30 }
  0x3f   : > { %159 = vst.msk [vmem:[%s673_s14] sm:$0xff] (!%p353_p10), %vm158_vm0, %v535_v0  ;;  %160 = vst.msk [vmem:[%s673_s14 + $0x8] sm:$0xff] (!%p353_p10), %vm158_vm0, %v535_v0 }
  0x40   : > { %161 = vst.msk [vmem:[%s673_s14 + $0x10] sm:$0xff] (!%p353_p10), %vm158_vm0, %v535_v0  ;;  %162 = vst.msk [vmem:[%s673_s14 + $0x18] sm:$0xff] (!%p353_p10), %vm158_vm0, %v535_v0 }
  0x43 PF: > { %v183_v1 = vld [vmem:[%s662_s19 + $0x80] sm:$0xff]  ;;  %v184_v2 = vld [vmem:[%s662_s19 + $0x88] sm:$0xff]  ;;  %v185_v3 = vld [vmem:[%s662_s19 + $0x90] sm:$0xff]  ;;  %vm239_vm1 = vcmask 7168   ;;  %p354_p7 = scmp.ne.s32.totalorder %s513_s9, 3 }
  0x44   : > { %v217_v4 = vadd.f32 %v184_v2, %v183_v1  ;;  %v186_v5 = vld [vmem:[%s662_s19 + $0x98] sm:$0xff]  ;;  %v167_v6 = vld [vmem:[%s662_s19] sm:$0xff]  ;;  %v168_v8 = vld [vmem:[%s662_s19 + $0x8] sm:$0xff] }
  0x45   : > { %v169_v9 = vld [vmem:[%s662_s19 + $0x10] sm:$0xff]  ;;  %v187_v10 = vld [vmem:[%s662_s19 + $0xa0] sm:$0xff]  ;;  %v199_v11 = vadd.f32 %v168_v8, %v167_v6  ;;  %v170_v13 = vld [vmem:[%s662_s19 + $0x18] sm:$0xff] }
  0x46   : > { %v218_v7 = vadd.f32 %v217_v4, %v185_v3  ;;  %v191_v14 = vld [vmem:[%s662_s19 + $0xc0] sm:$0xff]  ;;  %v192_v15 = vld [vmem:[%s662_s19 + $0xc8] sm:$0xff]  ;;  %v193_v18 = vld [vmem:[%s662_s19 + $0xd0] sm:$0xff] }
  0x47   : > { %v188_v16 = vld [vmem:[%s662_s19 + $0xa8] sm:$0xff]  ;;  %v200_v17 = vadd.f32 %v199_v11, %v169_v9  ;;  %v226_v19 = vadd.f32 %v192_v15, %v191_v14  ;;  %v189_v20 = vld [vmem:[%s662_s19 + $0xb0] sm:$0xff]  ;;  %v171_v22 = vld [vmem:[%s662_s19 + $0x20] sm:$0xff] }
  0x48   : > { %v219_v12 = vadd.f32 %v218_v7, %v186_v5  ;;  %v194_v23 = vld [vmem:[%s662_s19 + $0xd8] sm:$0xff]  ;;  %v175_v26 = vld [vmem:[%s662_s19 + $0x40] sm:$0xff]  ;;  %v176_v27 = vld [vmem:[%s662_s19 + $0x48] sm:$0xff] }
  0x49   : > { %v201_v24 = vadd.f32 %v200_v17, %v170_v13  ;;  %v227_v25 = vadd.f32 %v226_v19, %v193_v18  ;;  %v177_v28 = vld [vmem:[%s662_s19 + $0x50] sm:$0xff]  ;;  %v172_v30 = vld [vmem:[%s662_s19 + $0x28] sm:$0xff]  ;;  %v195_v31 = vld [vmem:[%s662_s19 + $0xe0] sm:$0xff]  ;;  %v208_v32 = vadd.f32 %v176_v27, %v175_v26 }
  0x4a   : > { %v220_v21 = vadd.f32 %v219_v12, %v187_v10  ;;  %v190_v33 = vld [vmem:[%s662_s19 + $0xb8] sm:$0xff]  ;;  %v173_v38 = vld [vmem:[%s662_s19 + $0x30] sm:$0xff]  ;;  %v196_v39 = vld [vmem:[%s662_s19 + $0xe8] sm:$0xff] }
  0x4b   : > { %v202_v34 = vadd.f32 %v201_v24, %v171_v22  ;;  %v228_v35 = vadd.f32 %v227_v25, %v194_v23  ;;  %v178_v36 = vld [vmem:[%s662_s19 + $0x58] sm:$0xff]  ;;  %v209_v40 = vadd.f32 %v208_v32, %v177_v28  ;;  %v179_v43 = vld [vmem:[%s662_s19 + $0x60] sm:$0xff]  ;;  %v197_v46 = vld [vmem:[%s662_s19 + $0xf0] sm:$0xff] }
  0x4c   : > { %v221_v29 = vadd.f32 %v220_v21, %v188_v16  ;;  %v174_v45 = vld [vmem:[%s662_s19 + $0x38] sm:$0xff]  ;;  %v180_v50 = vld [vmem:[%s662_s19 + $0x68] sm:$0xff]  ;;  %v181_v55 = vld [vmem:[%s662_s19 + $0x70] sm:$0xff] }
  0x4d   : > { %v203_v41 = vadd.f32 %v202_v34, %v172_v30  ;;  %v229_v42 = vadd.f32 %v228_v35, %v195_v31  ;;  %v210_v47 = vadd.f32 %v209_v40, %v178_v36  ;;  %v198_v51 = vld [vmem:[%s662_s19 + $0xf8] sm:$0xff]  ;;  %v165_v61 = vld [vmem:[%s673_s14 + $0x10] sm:$0xff]  ;;  %v163_v0 = vld [vmem:[%s673_s14] sm:$0xff] }
  0x4e   : > { %v222_v37 = vadd.f32 %v221_v29, %v189_v20  ;;  %v182_v58 = vld [vmem:[%s662_s19 + $0x78] sm:$0xff]  ;;  %v164_v6 = vld [vmem:[%s673_s14 + $0x8] sm:$0xff] }
  0x4f   : > { %v204_v48 = vadd.f32 %v203_v41, %v173_v38  ;;  %v230_v49 = vadd.f32 %v229_v42, %v196_v39  ;;  %v211_v52 = vadd.f32 %v210_v47, %v179_v43  ;;  %v166_v2 = vld [vmem:[%s673_s14 + $0x18] sm:$0xff] }
  0x50   : > { %v223_v44 = vadd.f32 %v222_v37, %v190_v33 }
  0x51   : > { %v205_v53 = vadd.f32 %v204_v48, %v174_v45  ;;  %v231_v54 = vadd.f32 %v230_v49, %v197_v46  ;;  %v212_v56 = vadd.f32 %v211_v52, %v180_v50 }
  0x52   : > { %224 = vadd.xlane.f32.xlu1 %v223_v44 }
  0x53   : > { %206 = vadd.xlane.f32.xlu0 %v205_v53  ;;  %v232_v57 = vadd.f32 %v231_v54, %v198_v51  ;;  %v213_v59 = vadd.f32 %v212_v56, %v181_v55 }
  0x55   : > { %v214_v60 = vadd.f32 %v213_v59, %v182_v58 }
  0x56   : > { %233 = vadd.xlane.f32.xlu1 %v232_v57 }
  0x57   : > { %215 = vadd.xlane.f32.xlu0 %v214_v60 }
  0xdf   : > { %v225_v62 = vpop.xlane.xlu1 %224 }
  0xe0   : > { %v237_v63 = vadd.f32 %v225_v62, %v165_v61  ;;  %v207_v1 = vpop.xlane.xlu0 %206 }
  0xe1   : > { %v235_v3 = vadd.f32 %v207_v1, %v163_v0  ;;  %247 = sbr.rel (%p354_p7) target bundleno = 242 (0xf2), region = 36 }
  0xe2   : > { %242 = vst.msk [vmem:[%s673_s14 + $0x10] sm:$0xff] %vm239_vm1, %v237_v63 }
  0xe3   : > { %v234_v4 = vpop.xlane.xlu1 %233  ;;  %240 = vst.msk [vmem:[%s673_s14] sm:$0xff] %vm239_vm1, %v235_v3 }
  0xe4   : > { %v238_v5 = vadd.f32 %v234_v4, %v166_v2  ;;  %v216_v7 = vpop.xlane.xlu0 %215 }
  0xe5   : > { %v236_v8 = vadd.f32 %v216_v7, %v164_v6 }
  0xe6   : > { %243 = vst.msk [vmem:[%s673_s14 + $0x18] sm:$0xff] %vm239_vm1, %v238_v5 }
  0xe7   : > { %241 = vst.msk [vmem:[%s673_s14 + $0x8] sm:$0xff] %vm239_vm1, %v236_v8 }
  0xe9   : > { %v250_v11 = vld [vmem:[%s673_s14 + $0x10] sm:$0xff] }
  0xea   : > { %v248_v9 = vld [vmem:[%s673_s14] sm:$0xff]  ;;  %v254_v14 = vmul.f32 0.00024414063, %v250_v11 }
  0xeb   : > { %v252_v12 = vmul.f32 0.00024414063, %v248_v9 }
  0xec   : > { %258 = vst.msk [vmem:[%s673_s14 + $0x10] sm:$0xff] %vm239_vm1, %v254_v14 }
  0xed   : > { %v251_v15 = vld [vmem:[%s673_s14 + $0x18] sm:$0xff]  ;;  %256 = vst.msk [vmem:[%s673_s14] sm:$0xff] %vm239_vm1, %v252_v12 }
  0xee   : > { %v249_v10 = vld [vmem:[%s673_s14 + $0x8] sm:$0xff]  ;;  %v255_v16 = vmul.f32 0.00024414063, %v251_v15 }
  0xef   : > { %v253_v13 = vmul.f32 0.00024414063, %v249_v10 }
  0xf0   : > { %259 = vst.msk [vmem:[%s673_s14 + $0x18] sm:$0xff] %vm239_vm1, %v255_v16 }
  0xf1   : > { %257 = vst.msk [vmem:[%s673_s14 + $0x8] sm:$0xff] %vm239_vm1, %v253_v13 }
  0xf2 PF: > { %s14_s13 = sadd.s32 1, %s529_s13   ;;  %s766_s6 = smov %s505_s7 }
  0xf3   : > { %p11_p6 = scmp.ge.s32.totalorder %s14_s13, 10   ;;  %s767_s7 = smov %s509_s8 }
  0xf4   : > { %s768_s8 = smov %s613_s26  ;;  %s769_s9 = smov %s521_s11 }
  0xf5   : > { %s770_s10 = smov %s525_s12  ;;  %s771_s11 = smov %s774_s15 }
  0xf6   : > { %s772_s12 = smov %s778_s16  ;;  %13 = sbr.rel (!%p11_p6) target bundleno = 5 (0x5), region = 72 }
  0xfd   :  { %281 = vsyncpa [#allocation3], 1 }
  0xfe   :  { %283 = vsyncpa [#allocation3 + $0x1], 1 }

</bundles_post_ra>
